<compile_context>
chip_gen: v7x
topology: tpu7x:2x2x1
jax: 0.10.0
libtpu: 0.0.40
codegen_flags: <defaults>
</compile_context>

<pallas_src>
from functools import partial

import numpy as np
import jax
import jax.numpy as jnp
from jax.experimental import pallas as pl
from jax.experimental.pallas import tpu as pltpu

LANES = 128
SUBLANES = 8
MAX_BLOCK_ROWS = 4096                 # 4096 x 128 f32 = 2 MiB / input / buffer
VMEM_LIMIT_BYTES = 48 * 1024 * 1024   # covers 2 inputs x 2 buffers + temporaries
EPS = 1e-10
PAD_PRED = 1.0e9                      # softplus(-1e9)==0 exactly; with gt=1 -> a=b=0


def _round_up(x, m):
    return ((x + m - 1) // m) * m


def _sublane_multiple(dtype):
    # Minimum second-to-last tile dim so packed narrow dtypes stay layout-legal.
    return SUBLANES * max(1, 4 // jnp.dtype(dtype).itemsize)


def _core_config():
    """(ncores, use_core_parallel): 2 TensorCores only on v7x-class chips."""
    try:
        kind = jax.devices()[0].device_kind.lower()
    except Exception:
        kind = ""
    if "v7" in kind:
        return 2, True
    return 1, False


def _bbce_partial_kernel(pred_ref, gt_ref, acc_ref, *, steps, block_rows,
                         valid_rows, ragged):
    """Accumulate per-lane partial sums into acc_ref (1, 24, 128):
       rows  0: 8 -> S_pos = sum(y)
       rows  8:16 -> A     = sum((1-y)*x + softplus(-x))
       rows 16:24 -> B     = sum(y * softplus(-x))
    """
    c = pl.program_id(0)
    i = pl.program_id(1)

    @pl.when(i == 0)
    def _init():
        acc_ref[...] = jnp.zeros_like(acc_ref)

    g = block_rows // SUBLANES

    def accumulate(x, y):
        neg_x = -x
        # softplus(-x) = max(-x,0) + log1p(exp(-|x|));  -|x| == min(-x, x).
        sp_negx = jnp.maximum(neg_x, 0.0) + jnp.log1p(jnp.exp(jnp.minimum(neg_x, x)))
        a = (1.0 - y) * x + sp_negx      # pos_weight-independent part
        b = y * sp_negx                  # coefficient of (pos_weight - 1)

        def fold(v):
            # (block_rows,128) -> (8,128) per-lane sums: vreg-wise VPU adds only.
            if g == 1:
                return v
            return jnp.sum(v.reshape(g, SUBLANES, LANES), axis=0)

        acc_ref[0, 0:SUBLANES, :] += fold(y)
        acc_ref[0, SUBLANES:2 * SUBLANES, :] += fold(a)
        acc_ref[0, 2 * SUBLANES:3 * SUBLANES, :] += fold(b)

    if not ragged:
        # Grid exactly covers the array: zero masking / iota work anywhere.
        accumulate(pred_ref[...].astype(jnp.float32),
                   gt_ref[...].astype(jnp.float32))
        return

    row0 = (c * steps + i) * block_rows   # global start row of this block

    @pl.when(row0 + block_rows <= valid_rows)
    def _full_block():                    # hot path: fully in-bounds
        accumulate(pred_ref[...].astype(jnp.float32),
                   gt_ref[...].astype(jnp.float32))

    @pl.when(jnp.logical_and(row0 + block_rows > valid_rows, row0 < valid_rows))
    def _tail_block():                    # cold path: neutral-mask OOB rows
        rid = row0 + jax.lax.broadcasted_iota(jnp.int32, (block_rows, LANES), 0)
        in_bounds = rid < valid_rows
        x = jnp.where(in_bounds, pred_ref[...].astype(jnp.float32), PAD_PRED)
        y = jnp.where(in_bounds, gt_ref[...].astype(jnp.float32), 1.0)
        accumulate(x, y)
    # Blocks with row0 >= valid_rows (duplicates produced by the clamped
    # index_map on grid over-coverage) contribute nothing.


def _bbce_partials(pred2, gt2, *, ncores, steps, block_rows, nblocks,
                   valid_rows, core_parallel):
    ragged = (ncores * steps != nblocks) or (nblocks * block_rows != valid_rows)
    kernel = partial(_bbce_partial_kernel, steps=steps, block_rows=block_rows,
                     valid_rows=valid_rows, ragged=ragged)

    def in_map(c, i):
        linear = c * steps + i
        if ncores * steps > nblocks:
            # Keep trailing over-coverage blocks in-bounds; the kernel skips them.
            linear = jnp.minimum(linear, nblocks - 1)
        return (linear, 0)

    sem0 = pltpu.CORE_PARALLEL if core_parallel else pltpu.PARALLEL
    return pl.pallas_call(
        kernel,
        out_shape=jax.ShapeDtypeStruct((ncores, 3 * SUBLANES, LANES), jnp.float32),
        grid_spec=pltpu.PrefetchScalarGridSpec(
            num_scalar_prefetch=0,
            grid=(ncores, steps),
            in_specs=[
                pl.BlockSpec((block_rows, LANES), in_map),
                pl.BlockSpec((block_rows, LANES), in_map),
            ],
            out_specs=pl.BlockSpec((1, 3 * SUBLANES, LANES),
                                   lambda c, i: (c, 0, 0)),
        ),
        compiler_params=pltpu.CompilerParams(
            dimension_semantics=(sem0, pltpu.ARBITRARY),
            vmem_limit_bytes=VMEM_LIMIT_BYTES,
        ),
    )(pred2, gt2)


def bbce_with_logit_loss(pred, gt, *, ncores=None, core_parallel=None):
    assert pred.shape == gt.shape
    total_n = int(np.prod(pred.shape))
    assert total_n > 0

    if ncores is None or core_parallel is None:
        auto_cores, auto_cp = _core_config()
        ncores = auto_cores if ncores is None else ncores
        core_parallel = auto_cp if core_parallel is None else core_parallel

    sub = max(_sublane_multiple(pred.dtype), _sublane_multiple(gt.dtype))

    pred_flat = pred.reshape(-1)
    gt_flat = gt.reshape(-1)
    lane_pad = (-total_n) % LANES
    if lane_pad:
        # Only remaining copy path: sizes not a multiple of 128 need a tiny
        # neutral tail pad so the flat array can be viewed as (rows, 128).
        pred_flat = jnp.pad(pred_flat, (0, lane_pad), constant_values=PAD_PRED)
        gt_flat = jnp.pad(gt_flat, (0, lane_pad), constant_values=1)
    rows = (total_n + lane_pad) // LANES
    pred2 = pred_flat.reshape(rows, LANES)
    gt2 = gt_flat.reshape(rows, LANES)

    block_rows = min(MAX_BLOCK_ROWS, _round_up(pl.cdiv(rows, ncores), sub))
    block_rows = max(block_rows, sub)
    nblocks = pl.cdiv(rows, block_rows)
    steps = pl.cdiv(nblocks, ncores)

    partials = _bbce_partials(
        pred2, gt2, ncores=ncores, steps=steps, block_rows=block_rows,
        nblocks=nblocks, valid_rows=rows, core_parallel=core_parallel)

    # --- tiny finalize in plain JAX on the per-core / per-lane partials ---
    sums = jnp.sum(partials.reshape(ncores, 3, SUBLANES, LANES), axis=(0, 2, 3))
    neutral = float(nblocks * block_rows * LANES - total_n)   # masked + padded count
    s_pos = sums[0] - neutral            # neutral elements carry gt == 1
    count_pos = s_pos + EPS
    count_neg = float(total_n) - s_pos   # == sum(1 - gt)
    ratio = count_neg / count_pos
    w_neg = count_pos / (count_pos + count_neg)
    mean_bce = (sums[1] + (ratio - 1.0) * sums[2]) / float(total_n)
    return w_neg * mean_bce


def bbce_loss(pred, gt):
    """Entry point with a portable fallback if CORE_PARALLEL is rejected."""
    ncores, core_parallel = _core_config()
    if ncores > 1 and core_parallel:
        try:
            return jax.block_until_ready(
                bbce_with_logit_loss(pred, gt, ncores=ncores, core_parallel=True))
        except Exception:
            pass  # fall back to the portable single-core-axis variant
    return bbce_with_logit_loss(pred, gt, ncores=1, core_parallel=False)


def _reference(pred, gt):
    """Pure-JAX reference mirroring the PyTorch module."""
    pred = pred.astype(jnp.float32)
    gt = gt.astype(jnp.float32)
    count_pos = jnp.sum(gt) + EPS
    count_neg = jnp.sum(1.0 - gt)
    ratio = count_neg / count_pos
    w_neg = count_pos / (count_pos + count_neg)
    sp_negx = jnp.maximum(-pred, 0.0) + jnp.log1p(jnp.exp(-jnp.abs(pred)))
    per_elem = (1.0 - gt) * pred + (1.0 + (ratio - 1.0) * gt) * sp_negx
    return w_neg * jnp.mean(per_elem)


if __name__ == "__main__":
    key = jax.random.PRNGKey(0)
    k1, k2 = jax.random.split(key)
    # NCHW logits and binary ground-truth mask, small shapes.
    pred = jax.random.normal(k1, (2, 4, 16, 16), dtype=jnp.float32) * 2.0
    gt = (jax.random.uniform(k2, (2, 4, 16, 16)) > 0.7).astype(jnp.float32)

    loss = jax.block_until_ready(bbce_loss(pred, gt))
    ref = jax.block_until_ready(_reference(pred, gt))
    assert np.allclose(np.asarray(loss), np.asarray(ref), rtol=1e-5, atol=1e-6), (
        f"kernel {loss} vs reference {ref}"
    )
    print("KERNEL_OK")
</pallas_src>

<mosaic_0001>
module attributes {stable_mosaic.version = 11 : i64} {
  func.func @_bbce_partial_kernel(%arg0: i32, %arg1: i32, %arg2: memref<16x128xf32, #tpu.memory_space<vmem>>, %arg3: memref<16x128xf32, #tpu.memory_space<vmem>>, %arg4: memref<1x24x128xf32, #tpu.memory_space<vmem>>) attributes {dimension_semantics = [#tpu.dimension_semantics<parallel>, #tpu.dimension_semantics<arbitrary>], iteration_bounds = array<i64: 1, 1>, scalar_prefetch = 0 : i64, scratch_operands = 0 : i64, tpu.core_type = #tpu.core_type<tc>, window_params = [{transform_indices = @transform_0, window_bounds = array<i64: 16, 128>}, {transform_indices = @transform_1, window_bounds = array<i64: 16, 128>}, {transform_indices = @transform_2, window_bounds = array<i64: 1, 24, 128>}]} {
    %c0_i32 = arith.constant 0 : i32
    %0 = arith.cmpi eq, %arg1, %c0_i32 : i32
    %1 = arith.extui %0 : i1 to i32
    %c0_i32_0 = arith.constant 0 : i32
    %2 = arith.cmpi ne, %1, %c0_i32_0 : i32
    scf.if %2 {
      %cst_25 = arith.constant 0.000000e+00 : f32
      %42 = vector.broadcast %cst_25 : f32 to vector<1x24x128xf32>
      %c0_26 = arith.constant 0 : index
      %c0_27 = arith.constant 0 : index
      %c0_28 = arith.constant 0 : index
      %43 = vector.load %arg4[%c0_26, %c0_27, %c0_28] : memref<1x24x128xf32, #tpu.memory_space<vmem>>, vector<1x24x128xf32>
      tpu.vector_store %arg4[%c0_26, %c0_27, %c0_28], %42 {strides = array<i32>} : memref<1x24x128xf32, #tpu.memory_space<vmem>>, vector<1x24x128xf32>,
    } else {
    }
    %c0 = arith.constant 0 : index
    %c0_1 = arith.constant 0 : index
    %3 = vector.load %arg2[%c0, %c0_1] : memref<16x128xf32, #tpu.memory_space<vmem>>, vector<16x128xf32>
    %c0_2 = arith.constant 0 : index
    %c0_3 = arith.constant 0 : index
    %4 = vector.load %arg3[%c0_2, %c0_3] : memref<16x128xf32, #tpu.memory_space<vmem>>, vector<16x128xf32>
    %cst = arith.constant 0.000000e+00 : f32
    %5 = vector.broadcast %cst : f32 to vector<16x128xf32>
    %6 = arith.subf %5, %3 : vector<16x128xf32>
    %cst_4 = arith.constant 0.000000e+00 : f32
    %7 = vector.broadcast %cst_4 : f32 to vector<16x128xf32>
    %8 = arith.maximumf %6, %7 : vector<16x128xf32>
    %9 = arith.minimumf %6, %3 : vector<16x128xf32>
    %10 = math.exp %9 : vector<16x128xf32>
    %11 = math.log1p %10 : vector<16x128xf32>
    %12 = arith.addf %8, %11 : vector<16x128xf32>
    %cst_5 = arith.constant 1.000000e+00 : f32
    %13 = vector.broadcast %cst_5 : f32 to vector<16x128xf32>
    %14 = arith.subf %13, %4 : vector<16x128xf32>
    %15 = arith.mulf %14, %3 : vector<16x128xf32>
    %16 = arith.addf %15, %12 : vector<16x128xf32>
    %17 = arith.mulf %4, %12 : vector<16x128xf32>
    %c0_6 = arith.constant 0 : index
    %c0_7 = arith.constant 0 : index
    %c0_8 = arith.constant 0 : index
    %18 = vector.load %arg4[%c0_6, %c0_7, %c0_8] : memref<1x24x128xf32, #tpu.memory_space<vmem>>, vector<1x8x128xf32>
    %19 = vector.shape_cast %18 : vector<1x8x128xf32> to vector<8x128xf32>
    %20 = vector.shape_cast %4 : vector<16x128xf32> to vector<2x8x128xf32>
    %cst_9 = arith.constant dense<0.000000e+00> : vector<8x128xf32>
    %21 = vector.multi_reduction <add>, %20, %cst_9 [0] : vector<2x8x128xf32> to vector<8x128xf32>
    %22 = arith.addf %19, %21 : vector<8x128xf32>
    %c0_10 = arith.constant 0 : index
    %c0_11 = arith.constant 0 : index
    %c0_12 = arith.constant 0 : index
    %23 = vector.load %arg4[%c0_10, %c0_11, %c0_12] : memref<1x24x128xf32, #tpu.memory_space<vmem>>, vector<1x8x128xf32>
    %24 = vector.shape_cast %23 : vector<1x8x128xf32> to vector<8x128xf32>
    %25 = vector.shape_cast %22 : vector<8x128xf32> to vector<1x8x128xf32>
    tpu.vector_store %arg4[%c0_10, %c0_11, %c0_12], %25 {strides = array<i32>} : memref<1x24x128xf32, #tpu.memory_space<vmem>>, vector<1x8x128xf32>,
    %c0_13 = arith.constant 0 : index
    %c8 = arith.constant 8 : index
    %c0_14 = arith.constant 0 : index
    %26 = vector.load %arg4[%c0_13, %c8, %c0_14] : memref<1x24x128xf32, #tpu.memory_space<vmem>>, vector<1x8x128xf32>
    %27 = vector.shape_cast %26 : vector<1x8x128xf32> to vector<8x128xf32>
    %28 = vector.shape_cast %16 : vector<16x128xf32> to vector<2x8x128xf32>
    %cst_15 = arith.constant dense<0.000000e+00> : vector<8x128xf32>
    %29 = vector.multi_reduction <add>, %28, %cst_15 [0] : vector<2x8x128xf32> to vector<8x128xf32>
    %30 = arith.addf %27, %29 : vector<8x128xf32>
    %c0_16 = arith.constant 0 : index
    %c8_17 = arith.constant 8 : index
    %c0_18 = arith.constant 0 : index
    %31 = vector.load %arg4[%c0_16, %c8_17, %c0_18] : memref<1x24x128xf32, #tpu.memory_space<vmem>>, vector<1x8x128xf32>
    %32 = vector.shape_cast %31 : vector<1x8x128xf32> to vector<8x128xf32>
    %33 = vector.shape_cast %30 : vector<8x128xf32> to vector<1x8x128xf32>
    tpu.vector_store %arg4[%c0_16, %c8_17, %c0_18], %33 {strides = array<i32>} : memref<1x24x128xf32, #tpu.memory_space<vmem>>, vector<1x8x128xf32>,
    %c0_19 = arith.constant 0 : index
    %c16 = arith.constant 16 : index
    %c0_20 = arith.constant 0 : index
    %34 = vector.load %arg4[%c0_19, %c16, %c0_20] : memref<1x24x128xf32, #tpu.memory_space<vmem>>, vector<1x8x128xf32>
    %35 = vector.shape_cast %34 : vector<1x8x128xf32> to vector<8x128xf32>
    %36 = vector.shape_cast %17 : vector<16x128xf32> to vector<2x8x128xf32>
    %cst_21 = arith.constant dense<0.000000e+00> : vector<8x128xf32>
    %37 = vector.multi_reduction <add>, %36, %cst_21 [0] : vector<2x8x128xf32> to vector<8x128xf32>
    %38 = arith.addf %35, %37 : vector<8x128xf32>
    %c0_22 = arith.constant 0 : index
    %c16_23 = arith.constant 16 : index
    %c0_24 = arith.constant 0 : index
    %39 = vector.load %arg4[%c0_22, %c16_23, %c0_24] : memref<1x24x128xf32, #tpu.memory_space<vmem>>, vector<1x8x128xf32>
    %40 = vector.shape_cast %39 : vector<1x8x128xf32> to vector<8x128xf32>
    %41 = vector.shape_cast %38 : vector<8x128xf32> to vector<1x8x128xf32>
    tpu.vector_store %arg4[%c0_22, %c16_23, %c0_24], %41 {strides = array<i32>} : memref<1x24x128xf32, #tpu.memory_space<vmem>>, vector<1x8x128xf32>,
    return
  }
  func.func @transform_0(%arg0: i32, %arg1: i32) -> (i32, i32) {
    %c1_i32 = arith.constant 1 : i32
    %0 = arith.muli %arg0, %c1_i32 : i32
    %1 = arith.addi %0, %arg1 : i32
    %c0_i32 = arith.constant 0 : i32
    %c0_i32_0 = arith.constant 0 : i32
    return %1, %c0_i32 : i32, i32
  }
  func.func @transform_1(%arg0: i32, %arg1: i32) -> (i32, i32) {
    %c1_i32 = arith.constant 1 : i32
    %0 = arith.muli %arg0, %c1_i32 : i32
    %1 = arith.addi %0, %arg1 : i32
    %c0_i32 = arith.constant 0 : i32
    %c0_i32_0 = arith.constant 0 : i32
    return %1, %c0_i32 : i32, i32
  }
  func.func @transform_2(%arg0: i32, %arg1: i32) -> (i32, i32, i32) {
    %c0_i32 = arith.constant 0 : i32
    %c0_i32_0 = arith.constant 0 : i32
    %c0_i32_1 = arith.constant 0 : i32
    return %arg0, %c0_i32, %c0_i32_0 : i32, i32, i32
  }
}

</mosaic_0001>

<bundles_post_ra>
// kernel: tpu_custom_call.1
= control target key start
LH: loop header
LB: loop body
LE: loop exit
PB: predicated region body
PF: predicated region fallthrough
CT: control target
= control target key end

     0   :  { %7 = vsyncpa [#allocation3], 0  ;;  %s282_s0 = inlined_call_operand.hbm [shape: f32[16,128], index: 0, kind: input, shape index: {}]   ;;  %s283_s1 = inlined_call_operand.hbm [shape: f32[16,128], index: 1, kind: input, shape index: {}]   ;;  %s284_s2 = inlined_call_operand.hbm [shape: f32[1,24,128], index: 2, kind: output, shape index: {}]  }
   0x1   :  { %8 = vsyncpa [#allocation6], 0 }
   0x2   :  { %9 = vsyncpa [#allocation4], 0  ;;  %s217_s9 = smov [#allocation2]   ;;  %s145_s13 = scalar_lea.hbm %s282_s0, 256 }
   0x3   :  { %s19_s10 = sshll.u32 %s217_s9, 4  ;;  %p146_p0 = scmp.ne.s32.totalorder %s282_s0, %s145_s13  ;;  %s20_s10 = int_to_ptr.vmem [resolvable:$true] %s19_s10 }
   0x4   :  { %p149_p1 = scmp.lt.u32.totalorder %s145_s13, %s282_s0 }
   0x6   :  { %p151_p2 = pnand %p149_p1, %p146_p0 }
   0x8   :  { %154 = shalt.err (!%p151_p2)
}
   0x9   :  { %s155_s18 = scalar_lea.vmem %s20_s10, 256  ;;  %p160_p4 = scmp.lt.s32.totalorder %s20_s10, %s20_s10 }
   0xa   :  { %p156_p3 = scmp.ne.s32.totalorder %s20_s10, %s155_s18  ;;  %p161_p5 = scmp.lt.s32.totalorder %s155_s18, %s155_s18 }
   0xc   :  { %p162_p6 = por %p161_p5, %p160_p4 }
   0xe   :  { %p163_p7 = pnand %p162_p6, %p156_p3 }
  0x10   :  { %166 = shalt.err (!%p163_p7)
}
  0x11   :  { %s218_s19 = smov 128   ;;  %s219_s20 = smov 8  }
  0x12   :  { %25 = dma.hbm_to_vmem [thread:$0]  %s282_s0, 256, %s20_s10, [#allocation3], %s218_s19, %s218_s19, %s219_s20  }
  0x13   :  { %s220_s23 = smov [#allocation5]   ;;  %s167_s27 = scalar_lea.hbm %s283_s1, 256 }
  0x14   :  { %s35_s24 = sshll.u32 %s220_s23, 4  ;;  %p168_p8 = scmp.ne.s32.totalorder %s283_s1, %s167_s27  ;;  %s36_s24 = int_to_ptr.vmem [resolvable:$true] %s35_s24 }
  0x15   :  { %p171_p9 = scmp.lt.u32.totalorder %s167_s27, %s283_s1 }
  0x17   :  { %p173_p10 = pnand %p171_p9, %p168_p8 }
  0x19   :  { %176 = shalt.err (!%p173_p10)
}
  0x1a   :  { %s177_s4 = scalar_lea.vmem %s36_s24, 256  ;;  %p182_p12 = scmp.lt.s32.totalorder %s36_s24, %s36_s24 }
  0x1b   :  { %p178_p11 = scmp.ne.s32.totalorder %s36_s24, %s177_s4  ;;  %p183_p13 = scmp.lt.s32.totalorder %s177_s4, %s177_s4 }
  0x1d   :  { %p184_p0 = por %p183_p13, %p182_p12 }
  0x1f   :  { %p185_p1 = pnand %p184_p0, %p178_p11 }
  0x21   :  { %188 = shalt.err (!%p185_p1)
}
  0x22   :  { %41 = dma.hbm_to_vmem [thread:$0]  %s283_s1, 256, %s36_s24, [#allocation6], %s218_s19, %s218_s19, %s219_s20  }
  0x23   :  { %211 = dma.done.wait [#allocation3], 256  }
  0x24   :  { %212 = vsyncadd [#allocation3], 4294967040 }
  0x25   :  { %213 = dma.done.wait [#allocation6], 256  }
  0x26   :  { %214 = vsyncadd [#allocation6], 4294967040  ;;  %v61_v0 = vld [vmem:[#allocation5] sm:$0xff]  ;;  %v62_v1 = vld [vmem:[#allocation5 + $0x8] sm:$0xff]  ;;  %s221_s1 = smov [#allocation7]  }
  0x27   :  { %v59_v2 = vld [vmem:[#allocation2] sm:$0xff]  ;;  %v102_v3 = vadd.f32 %v62_v1, %v61_v0  ;;  %v60_v4 = vld [vmem:[#allocation2 + $0x8] sm:$0xff]  ;;  %v93_v21 = vsub.f32 1.0, %v61_v0  ;;  %v94_v22 = vsub.f32 1.0, %v62_v1  ;;  %s118_s6 = sshll.u32 %s221_s1, 4  ;;  %s119_s6 = int_to_ptr.vmem [resolvable:$true] %s118_s6 }
  0x28   :  { %v63_v5 = vsub.f32 0.0, %v59_v2  ;;  %v64_v6 = vsub.f32 0.0, %v60_v4  ;;  %s189_s7 = scalar_lea.vmem %s119_s6, 384  ;;  %p194_p3 = scmp.lt.s32.totalorder %s119_s6, %s119_s6 }
  0x29   :  { %104 = vst [vmem:[#allocation7] sm:$0xff] %v102_v3  ;;  %v95_v31 = vmul.f32 %v93_v21, %v59_v2  ;;  %v96_v33 = vmul.f32 %v94_v22, %v60_v4  ;;  %p190_p2 = scmp.ne.s32.totalorder %s119_s6, %s189_s7  ;;  %p195_p4 = scmp.lt.s32.totalorder %s189_s7, %s189_s7 }
  0x2a   :  { %v67_v7 = vmin.f32 %v63_v5, %v59_v2  ;;  %v68_v8 = vmin.f32 %v64_v6, %v60_v4  ;;  %v65_v25 = vmax.f32 %v63_v5, 0.0  ;;  %v66_v28 = vmax.f32 %v64_v6, 0.0 }
  0x2b   :  { %p196_p5 = por %p195_p4, %p194_p3 }
  0x2c   :  { %v69_v9 = vmul.f32 1.442695, %v67_v7  ;;  %v71_v10 = vmul.f32 1.442695, %v68_v8 }
  0x2d   :  { %p197_p6 = pnand %p196_p5, %p190_p2 }
  0x2e   :  { %137 = vpow2.f32 %v69_v9 }
  0x2f   :  { %139 = vpow2.f32 %v71_v10 }
  0x38   :  { %v138_v11 = vpop.eup %137 }
  0x39   :  { %v140_v12 = vpop.eup %139  ;;  %v73_v13 = vadd.f32 1.0, %v138_v11  ;;  %v76_v15 = vmul.f32 -0.5, %v138_v11  ;;  %v79_v18 = vand.u32 2147483647, %v138_v11 }
  0x3a   :  { %v82_v14 = vadd.f32 1.0, %v140_v12  ;;  %v85_v16 = vmul.f32 -0.5, %v140_v12  ;;  %v88_v20 = vand.u32 2147483647, %v140_v12 }
  0x3b   :  { %141 = vlog2.f32 %v73_v13  ;;  %v77_v17 = vadd.f32 1.0, %v76_v15  ;;  %vm80_vm0 = vcmp.lt.f32.partialorder %v79_v18, 0.0004427343 }
  0x3c   :  { %143 = vlog2.f32 %v82_v14  ;;  %v86_v19 = vadd.f32 1.0, %v85_v16  ;;  %vm89_vm1 = vcmp.lt.f32.partialorder %v88_v20, 0.0004427343 }
  0x3d   :  { %v78_v23 = vmul.f32 %v138_v11, %v77_v17 }
  0x3e   :  { %v87_v26 = vmul.f32 %v140_v12, %v86_v19 }
  0x45   :  { %v142_v24 = vpop.eup %141 }
  0x46   :  { %v144_v27 = vpop.eup %143  ;;  %v75_v29 = vmul.f32 0.6931472, %v142_v24 }
  0x47   :  { %v84_v30 = vmul.f32 0.6931472, %v144_v27 }
  0x48   :  { %v81_v32 = vsel %vm80_vm0, %v78_v23, %v75_v29 }
  0x49   :  { %v90_v34 = vsel %vm89_vm1, %v87_v26, %v84_v30  ;;  %v91_v35 = vadd.f32 %v81_v32, %v65_v25 }
  0x4a   :  { %v92_v36 = vadd.f32 %v90_v34, %v66_v28 }
  0x4b   :  { %v97_v37 = vadd.f32 %v95_v31, %v91_v35  ;;  %v99_v38 = vmul.f32 %v91_v35, %v61_v0 }
  0x4c   :  { %v98_v39 = vadd.f32 %v96_v33, %v92_v36  ;;  %v100_v40 = vmul.f32 %v92_v36, %v62_v1 }
  0x4e   :  { %v106_v41 = vadd.f32 %v98_v39, %v97_v37  ;;  %v110_v42 = vadd.f32 %v100_v40, %v99_v38 }
  0x50   :  { %108 = vst [vmem:[#allocation7 + $0x8] sm:$0xff] %v106_v41  ;;  %112 = vst [vmem:[#allocation7 + $0x10] sm:$0xff] %v110_v42 }
  0x51   :  { %200 = shalt.err (!%p197_p6)
}
  0x52   :  { %s201_s10 = scalar_lea.hbm %s284_s2, 384 }
  0x53   :  { %p202_p7 = scmp.ne.s32.totalorder %s284_s2, %s201_s10  ;;  %p205_p8 = scmp.lt.u32.totalorder %s201_s10, %s284_s2 }
  0x55   :  { %p207_p9 = pnand %p205_p8, %p202_p7 }
  0x57   :  { %210 = shalt.err (!%p207_p9)
}
  0x58   :  { %124 = dma.vmem_to_hbm [thread:$0]  %s119_s6, 384, %s284_s2, [#allocation4], %s218_s19, %s218_s19, %s219_s20  }
  0x59   :  { %215 = dma.done.wait [#allocation4], 384  }
  0x5a   :  { %216 = vsyncadd [#allocation4], 4294966912 }
  0x5b   :  { %128 = vsyncpa [#allocation3], 1 }
  0x5c   :  { %129 = vsyncpa [#allocation6], 1 }
  0x5d   :  { %130 = vsyncpa [#allocation4], 1 }

</bundles_post_ra>
